<compile_context>
chip_gen: v5e
topology: v5e:2x2
jax: 0.10.0
libtpu: 0.0.40
codegen_flags: <defaults>
</compile_context>

<pallas_src>
import math

import jax
import jax.numpy as jnp
from jax.experimental import pallas as pl
from jax.experimental.pallas import tpu as pltpu


def lstm_kernel(x_ref, wih_ref, whh_ref, b_ref, wlin_ref, blin_ref, out_ref):
    """Full LSTM recurrence + final linear + sigmoid in one program.

    x_ref    : (B, T)   input sequence (feature dim already squeezed)
    wih_ref  : (1, 4H)  input->gates weights (PyTorch weight_ih_l0 reshaped)
    whh_ref  : (H, 4H)  hidden->gates weights (PyTorch weight_hh_l0.T)
    b_ref    : (1, 4H)  bias_ih + bias_hh
    wlin_ref : (1, H)   final linear weight (row form)
    blin_ref : (1, 1)   final linear bias
    out_ref  : (B, 1)   sigmoid(linear(h_T))
    """
    B, T = x_ref.shape
    H = whh_ref.shape[0]
    G = 4 * H

    xv = x_ref[...]            # (B, T) — one vreg, loaded once
    w_hh = whh_ref[...]        # (H, 4H)

    # Hoist step-invariant broadcasts out of the unrolled recurrence.
    wih_b = jnp.broadcast_to(wih_ref[...], (B, G))   # (B, 4H)
    bias_b = jnp.broadcast_to(b_ref[...], (B, G))    # (B, 4H)

    h = jnp.zeros((B, H), jnp.float32)
    c = jnp.zeros((B, H), jnp.float32)

    # T is a compile-time constant -> fully unrolled, maximal scheduler
    # visibility; each iteration is one small MXU matmul + 2 full-width EUP
    # issues + a handful of VPU ops.
    for t in range(T):
        x_t = xv[:, t:t + 1]                                    # (B, 1)
        gates = (x_t * wih_b + bias_b
                 + jnp.dot(h, w_hh, preferred_element_type=jnp.float32))
        # Full 128-lane transcendentals; gate layout is PyTorch [i, f, g, o].
        sig = jax.nn.sigmoid(gates)
        tnh = jnp.tanh(gates)
        i = sig[:, 0:H]
        f = sig[:, H:2 * H]
        g = tnh[:, 2 * H:3 * H]
        o = sig[:, 3 * H:4 * H]
        c = f * c + i * g
        h = o * jnp.tanh(c)

    # Final linear (H -> 1): VPU multiply + lane reduction, no MXU.
    logits = jnp.sum(h * wlin_ref[...], axis=-1, keepdims=True) + blin_ref[...]
    out_ref[...] = jax.nn.sigmoid(logits)


def lstm_model(x, w_ih, w_hh, b_ih, b_hh, w_lin, b_lin):
    """x: (B, T, 1) f32 -> (B, 1) f32, matching Model.forward semantics."""
    B, T, _ = x.shape
    H = w_hh.shape[1]

    x_bt = x[:, :, 0]                             # (B, T)
    wih_row = jnp.reshape(w_ih, (1, 4 * H))       # (4H, 1) -> (1, 4H)
    whh_t = jnp.transpose(w_hh)                   # (4H, H) -> (H, 4H)
    b_row = jnp.reshape(b_ih + b_hh, (1, 4 * H))  # (1, 4H)
    wlin_row = jnp.reshape(w_lin, (1, H))         # (1, H)
    blin = jnp.reshape(b_lin, (1, 1))             # (1, 1)

    return pl.pallas_call(
        lstm_kernel,
        out_shape=jax.ShapeDtypeStruct((B, 1), jnp.float32),
        in_specs=[pl.BlockSpec(memory_space=pltpu.MemorySpace.VMEM)] * 6,
        out_specs=pl.BlockSpec(memory_space=pltpu.MemorySpace.VMEM),
    )(x_bt, wih_row, whh_t, b_row, wlin_row, blin)
    # TODO(synk): if batch grows beyond a few vregs, add a batch grid axis with
    # dimension_semantics=("parallel",) so v7x can shard across both TCs.


def reference(x, w_ih, w_hh, b_ih, b_hh, w_lin, b_lin):
    """Pure-JAX replica of the PyTorch forward (correctness check)."""
    B, T, _ = x.shape
    H = w_hh.shape[1]
    h = jnp.zeros((B, H), jnp.float32)
    c = jnp.zeros((B, H), jnp.float32)
    for t in range(T):
        xt = x[:, t, :]                                   # (B, 1)
        gates = xt @ w_ih.T + h @ w_hh.T + b_ih + b_hh    # (B, 4H)
        i = jax.nn.sigmoid(gates[:, 0:H])
        f = jax.nn.sigmoid(gates[:, H:2 * H])
        g = jnp.tanh(gates[:, 2 * H:3 * H])
        o = jax.nn.sigmoid(gates[:, 3 * H:4 * H])
        c = f * c + i * g
        h = o * jnp.tanh(c)
    return jax.nn.sigmoid(h @ w_lin.T + b_lin)


if __name__ == "__main__":
    B, T, H = 8, 8, 32

    key = jax.random.PRNGKey(0)
    ks = jax.random.split(key, 7)
    bound = 1.0 / math.sqrt(H)  # PyTorch default LSTM/Linear init range

    w_ih = jax.random.uniform(ks[0], (4 * H, 1), jnp.float32, -bound, bound)
    w_hh = jax.random.uniform(ks[1], (4 * H, H), jnp.float32, -bound, bound)
    b_ih = jax.random.uniform(ks[2], (4 * H,), jnp.float32, -bound, bound)
    b_hh = jax.random.uniform(ks[3], (4 * H,), jnp.float32, -bound, bound)
    w_lin = jax.random.uniform(ks[4], (1, H), jnp.float32, -bound, bound)
    b_lin = jax.random.uniform(ks[5], (1,), jnp.float32, -bound, bound)
    x = jax.random.normal(ks[6], (B, T, 1), jnp.float32)

    out = lstm_model(x, w_ih, w_hh, b_ih, b_hh, w_lin, b_lin)
    out = jax.block_until_ready(out)

    ref = reference(x, w_ih, w_hh, b_ih, b_hh, w_lin, b_lin)
    assert out.shape == (B, 1), out.shape
    assert jnp.allclose(out, ref, atol=1e-5, rtol=1e-5), (
        f"max abs diff {jnp.max(jnp.abs(out - ref))}")
    print("KERNEL_OK")
</pallas_src>

<mosaic_0001>
module attributes {stable_mosaic.version = 11 : i64} {
  func.func @lstm_kernel(%arg0: memref<8x8xf32, #tpu.memory_space<vmem>>, %arg1: memref<1x128xf32, #tpu.memory_space<vmem>>, %arg2: memref<32x128xf32, #tpu.memory_space<vmem>>, %arg3: memref<1x128xf32, #tpu.memory_space<vmem>>, %arg4: memref<1x32xf32, #tpu.memory_space<vmem>>, %arg5: memref<1x1xf32, #tpu.memory_space<vmem>>, %arg6: memref<8x1xf32, #tpu.memory_space<vmem>>) attributes {dimension_semantics = [], scalar_prefetch = 0 : i64, scratch_operands = 0 : i64, tpu.core_type = #tpu.core_type<tc>} {
    %c0 = arith.constant 0 : index
    %c0_0 = arith.constant 0 : index
    %0 = vector.load %arg0[%c0, %c0_0] : memref<8x8xf32, #tpu.memory_space<vmem>>, vector<8x8xf32>
    %c0_1 = arith.constant 0 : index
    %c0_2 = arith.constant 0 : index
    %1 = vector.load %arg2[%c0_1, %c0_2] : memref<32x128xf32, #tpu.memory_space<vmem>>, vector<32x128xf32>
    %c0_3 = arith.constant 0 : index
    %c0_4 = arith.constant 0 : index
    %2 = vector.load %arg1[%c0_3, %c0_4] : memref<1x128xf32, #tpu.memory_space<vmem>>, vector<1x128xf32>
    %3 = vector.shape_cast %2 : vector<1x128xf32> to vector<1x128xf32>
    %4 = vector.broadcast %3 : vector<1x128xf32> to vector<8x128xf32>
    %c0_5 = arith.constant 0 : index
    %c0_6 = arith.constant 0 : index
    %5 = vector.load %arg3[%c0_5, %c0_6] : memref<1x128xf32, #tpu.memory_space<vmem>>, vector<1x128xf32>
    %6 = vector.shape_cast %5 : vector<1x128xf32> to vector<1x128xf32>
    %7 = vector.broadcast %6 : vector<1x128xf32> to vector<8x128xf32>
    %cst = arith.constant 0.000000e+00 : f32
    %8 = vector.broadcast %cst : f32 to vector<8x32xf32>
    %cst_7 = arith.constant 0.000000e+00 : f32
    %9 = vector.broadcast %cst_7 : f32 to vector<8x32xf32>
    %10 = vector.extract_strided_slice %0 {offsets = [0, 0], sizes = [8, 1], strides = [1, 1]} : vector<8x8xf32> to vector<8x1xf32>
    %11 = vector.broadcast %10 : vector<8x1xf32> to vector<8x128xf32>
    %12 = arith.mulf %11, %4 : vector<8x128xf32>
    %13 = arith.addf %12, %7 : vector<8x128xf32>
    %cst_8 = arith.constant dense<0.000000e+00> : vector<8x128xf32>
    %14 = tpu.matmul %8, %1, %cst_8 {dimension_numbers = #tpu.dot_dimension_numbers<[1], [0], [0], [1], [0, 0, 1, 1], [], []>} : vector<8x32xf32>, vector<32x128xf32>, vector<8x128xf32> -> vector<8x128xf32>
    %15 = arith.addf %13, %14 : vector<8x128xf32>
    %16 = arith.negf %15 : vector<8x128xf32>
    %17 = math.exp %16 : vector<8x128xf32>
    %cst_9 = arith.constant 1.000000e+00 : f32
    %18 = vector.broadcast %cst_9 : f32 to vector<8x128xf32>
    %19 = arith.addf %18, %17 : vector<8x128xf32>
    %20 = arith.divf %18, %19 : vector<8x128xf32>
    %21 = math.tanh %15 : vector<8x128xf32>
    %22 = vector.extract_strided_slice %20 {offsets = [0, 0], sizes = [8, 32], strides = [1, 1]} : vector<8x128xf32> to vector<8x32xf32>
    %23 = vector.extract_strided_slice %20 {offsets = [0, 32], sizes = [8, 32], strides = [1, 1]} : vector<8x128xf32> to vector<8x32xf32>
    %24 = vector.extract_strided_slice %21 {offsets = [0, 64], sizes = [8, 32], strides = [1, 1]} : vector<8x128xf32> to vector<8x32xf32>
    %25 = vector.extract_strided_slice %20 {offsets = [0, 96], sizes = [8, 32], strides = [1, 1]} : vector<8x128xf32> to vector<8x32xf32>
    %26 = arith.mulf %23, %9 : vector<8x32xf32>
    %27 = arith.mulf %22, %24 : vector<8x32xf32>
    %28 = arith.addf %26, %27 : vector<8x32xf32>
    %29 = math.tanh %28 : vector<8x32xf32>
    %30 = arith.mulf %25, %29 : vector<8x32xf32>
    %31 = vector.extract_strided_slice %0 {offsets = [0, 1], sizes = [8, 1], strides = [1, 1]} : vector<8x8xf32> to vector<8x1xf32>
    %32 = vector.broadcast %31 : vector<8x1xf32> to vector<8x128xf32>
    %33 = arith.mulf %32, %4 : vector<8x128xf32>
    %34 = arith.addf %33, %7 : vector<8x128xf32>
    %cst_10 = arith.constant dense<0.000000e+00> : vector<8x128xf32>
    %35 = tpu.matmul %30, %1, %cst_10 {dimension_numbers = #tpu.dot_dimension_numbers<[1], [0], [0], [1], [0, 0, 1, 1], [], []>} : vector<8x32xf32>, vector<32x128xf32>, vector<8x128xf32> -> vector<8x128xf32>
    %36 = arith.addf %34, %35 : vector<8x128xf32>
    %37 = arith.negf %36 : vector<8x128xf32>
    %38 = math.exp %37 : vector<8x128xf32>
    %cst_11 = arith.constant 1.000000e+00 : f32
    %39 = vector.broadcast %cst_11 : f32 to vector<8x128xf32>
    %40 = arith.addf %39, %38 : vector<8x128xf32>
    %41 = arith.divf %39, %40 : vector<8x128xf32>
    %42 = math.tanh %36 : vector<8x128xf32>
    %43 = vector.extract_strided_slice %41 {offsets = [0, 0], sizes = [8, 32], strides = [1, 1]} : vector<8x128xf32> to vector<8x32xf32>
    %44 = vector.extract_strided_slice %41 {offsets = [0, 32], sizes = [8, 32], strides = [1, 1]} : vector<8x128xf32> to vector<8x32xf32>
    %45 = vector.extract_strided_slice %42 {offsets = [0, 64], sizes = [8, 32], strides = [1, 1]} : vector<8x128xf32> to vector<8x32xf32>
    %46 = vector.extract_strided_slice %41 {offsets = [0, 96], sizes = [8, 32], strides = [1, 1]} : vector<8x128xf32> to vector<8x32xf32>
    %47 = arith.mulf %44, %28 : vector<8x32xf32>
    %48 = arith.mulf %43, %45 : vector<8x32xf32>
    %49 = arith.addf %47, %48 : vector<8x32xf32>
    %50 = math.tanh %49 : vector<8x32xf32>
    %51 = arith.mulf %46, %50 : vector<8x32xf32>
    %52 = vector.extract_strided_slice %0 {offsets = [0, 2], sizes = [8, 1], strides = [1, 1]} : vector<8x8xf32> to vector<8x1xf32>
    %53 = vector.broadcast %52 : vector<8x1xf32> to vector<8x128xf32>
    %54 = arith.mulf %53, %4 : vector<8x128xf32>
    %55 = arith.addf %54, %7 : vector<8x128xf32>
    %cst_12 = arith.constant dense<0.000000e+00> : vector<8x128xf32>
    %56 = tpu.matmul %51, %1, %cst_12 {dimension_numbers = #tpu.dot_dimension_numbers<[1], [0], [0], [1], [0, 0, 1, 1], [], []>} : vector<8x32xf32>, vector<32x128xf32>, vector<8x128xf32> -> vector<8x128xf32>
    %57 = arith.addf %55, %56 : vector<8x128xf32>
    %58 = arith.negf %57 : vector<8x128xf32>
    %59 = math.exp %58 : vector<8x128xf32>
    %cst_13 = arith.constant 1.000000e+00 : f32
    %60 = vector.broadcast %cst_13 : f32 to vector<8x128xf32>
    %61 = arith.addf %60, %59 : vector<8x128xf32>
    %62 = arith.divf %60, %61 : vector<8x128xf32>
    %63 = math.tanh %57 : vector<8x128xf32>
    %64 = vector.extract_strided_slice %62 {offsets = [0, 0], sizes = [8, 32], strides = [1, 1]} : vector<8x128xf32> to vector<8x32xf32>
    %65 = vector.extract_strided_slice %62 {offsets = [0, 32], sizes = [8, 32], strides = [1, 1]} : vector<8x128xf32> to vector<8x32xf32>
    %66 = vector.extract_strided_slice %63 {offsets = [0, 64], sizes = [8, 32], strides = [1, 1]} : vector<8x128xf32> to vector<8x32xf32>
    %67 = vector.extract_strided_slice %62 {offsets = [0, 96], sizes = [8, 32], strides = [1, 1]} : vector<8x128xf32> to vector<8x32xf32>
    %68 = arith.mulf %65, %49 : vector<8x32xf32>
    %69 = arith.mulf %64, %66 : vector<8x32xf32>
    %70 = arith.addf %68, %69 : vector<8x32xf32>
    %71 = math.tanh %70 : vector<8x32xf32>
    %72 = arith.mulf %67, %71 : vector<8x32xf32>
    %73 = vector.extract_strided_slice %0 {offsets = [0, 3], sizes = [8, 1], strides = [1, 1]} : vector<8x8xf32> to vector<8x1xf32>
    %74 = vector.broadcast %73 : vector<8x1xf32> to vector<8x128xf32>
    %75 = arith.mulf %74, %4 : vector<8x128xf32>
    %76 = arith.addf %75, %7 : vector<8x128xf32>
    %cst_14 = arith.constant dense<0.000000e+00> : vector<8x128xf32>
    %77 = tpu.matmul %72, %1, %cst_14 {dimension_numbers = #tpu.dot_dimension_numbers<[1], [0], [0], [1], [0, 0, 1, 1], [], []>} : vector<8x32xf32>, vector<32x128xf32>, vector<8x128xf32> -> vector<8x128xf32>
    %78 = arith.addf %76, %77 : vector<8x128xf32>
    %79 = arith.negf %78 : vector<8x128xf32>
    %80 = math.exp %79 : vector<8x128xf32>
    %cst_15 = arith.constant 1.000000e+00 : f32
    %81 = vector.broadcast %cst_15 : f32 to vector<8x128xf32>
    %82 = arith.addf %81, %80 : vector<8x128xf32>
    %83 = arith.divf %81, %82 : vector<8x128xf32>
    %84 = math.tanh %78 : vector<8x128xf32>
    %85 = vector.extract_strided_slice %83 {offsets = [0, 0], sizes = [8, 32], strides = [1, 1]} : vector<8x128xf32> to vector<8x32xf32>
    %86 = vector.extract_strided_slice %83 {offsets = [0, 32], sizes = [8, 32], strides = [1, 1]} : vector<8x128xf32> to vector<8x32xf32>
    %87 = vector.extract_strided_slice %84 {offsets = [0, 64], sizes = [8, 32], strides = [1, 1]} : vector<8x128xf32> to vector<8x32xf32>
    %88 = vector.extract_strided_slice %83 {offsets = [0, 96], sizes = [8, 32], strides = [1, 1]} : vector<8x128xf32> to vector<8x32xf32>
    %89 = arith.mulf %86, %70 : vector<8x32xf32>
    %90 = arith.mulf %85, %87 : vector<8x32xf32>
    %91 = arith.addf %89, %90 : vector<8x32xf32>
    %92 = math.tanh %91 : vector<8x32xf32>
    %93 = arith.mulf %88, %92 : vector<8x32xf32>
    %94 = vector.extract_strided_slice %0 {offsets = [0, 4], sizes = [8, 1], strides = [1, 1]} : vector<8x8xf32> to vector<8x1xf32>
    %95 = vector.broadcast %94 : vector<8x1xf32> to vector<8x128xf32>
    %96 = arith.mulf %95, %4 : vector<8x128xf32>
    %97 = arith.addf %96, %7 : vector<8x128xf32>
    %cst_16 = arith.constant dense<0.000000e+00> : vector<8x128xf32>
    %98 = tpu.matmul %93, %1, %cst_16 {dimension_numbers = #tpu.dot_dimension_numbers<[1], [0], [0], [1], [0, 0, 1, 1], [], []>} : vector<8x32xf32>, vector<32x128xf32>, vector<8x128xf32> -> vector<8x128xf32>
    %99 = arith.addf %97, %98 : vector<8x128xf32>
    %100 = arith.negf %99 : vector<8x128xf32>
    %101 = math.exp %100 : vector<8x128xf32>
    %cst_17 = arith.constant 1.000000e+00 : f32
    %102 = vector.broadcast %cst_17 : f32 to vector<8x128xf32>
    %103 = arith.addf %102, %101 : vector<8x128xf32>
    %104 = arith.divf %102, %103 : vector<8x128xf32>
    %105 = math.tanh %99 : vector<8x128xf32>
    %106 = vector.extract_strided_slice %104 {offsets = [0, 0], sizes = [8, 32], strides = [1, 1]} : vector<8x128xf32> to vector<8x32xf32>
    %107 = vector.extract_strided_slice %104 {offsets = [0, 32], sizes = [8, 32], strides = [1, 1]} : vector<8x128xf32> to vector<8x32xf32>
    %108 = vector.extract_strided_slice %105 {offsets = [0, 64], sizes = [8, 32], strides = [1, 1]} : vector<8x128xf32> to vector<8x32xf32>
    %109 = vector.extract_strided_slice %104 {offsets = [0, 96], sizes = [8, 32], strides = [1, 1]} : vector<8x128xf32> to vector<8x32xf32>
    %110 = arith.mulf %107, %91 : vector<8x32xf32>
    %111 = arith.mulf %106, %108 : vector<8x32xf32>
    %112 = arith.addf %110, %111 : vector<8x32xf32>
    %113 = math.tanh %112 : vector<8x32xf32>
    %114 = arith.mulf %109, %113 : vector<8x32xf32>
    %115 = vector.extract_strided_slice %0 {offsets = [0, 5], sizes = [8, 1], strides = [1, 1]} : vector<8x8xf32> to vector<8x1xf32>
    %116 = vector.broadcast %115 : vector<8x1xf32> to vector<8x128xf32>
    %117 = arith.mulf %116, %4 : vector<8x128xf32>
    %118 = arith.addf %117, %7 : vector<8x128xf32>
    %cst_18 = arith.constant dense<0.000000e+00> : vector<8x128xf32>
    %119 = tpu.matmul %114, %1, %cst_18 {dimension_numbers = #tpu.dot_dimension_numbers<[1], [0], [0], [1], [0, 0, 1, 1], [], []>} : vector<8x32xf32>, vector<32x128xf32>, vector<8x128xf32> -> vector<8x128xf32>
    %120 = arith.addf %118, %119 : vector<8x128xf32>
    %121 = arith.negf %120 : vector<8x128xf32>
    %122 = math.exp %121 : vector<8x128xf32>
    %cst_19 = arith.constant 1.000000e+00 : f32
    %123 = vector.broadcast %cst_19 : f32 to vector<8x128xf32>
    %124 = arith.addf %123, %122 : vector<8x128xf32>
    %125 = arith.divf %123, %124 : vector<8x128xf32>
    %126 = math.tanh %120 : vector<8x128xf32>
    %127 = vector.extract_strided_slice %125 {offsets = [0, 0], sizes = [8, 32], strides = [1, 1]} : vector<8x128xf32> to vector<8x32xf32>
    %128 = vector.extract_strided_slice %125 {offsets = [0, 32], sizes = [8, 32], strides = [1, 1]} : vector<8x128xf32> to vector<8x32xf32>
    %129 = vector.extract_strided_slice %126 {offsets = [0, 64], sizes = [8, 32], strides = [1, 1]} : vector<8x128xf32> to vector<8x32xf32>
    %130 = vector.extract_strided_slice %125 {offsets = [0, 96], sizes = [8, 32], strides = [1, 1]} : vector<8x128xf32> to vector<8x32xf32>
    %131 = arith.mulf %128, %112 : vector<8x32xf32>
    %132 = arith.mulf %127, %129 : vector<8x32xf32>
    %133 = arith.addf %131, %132 : vector<8x32xf32>
    %134 = math.tanh %133 : vector<8x32xf32>
    %135 = arith.mulf %130, %134 : vector<8x32xf32>
    %136 = vector.extract_strided_slice %0 {offsets = [0, 6], sizes = [8, 1], strides = [1, 1]} : vector<8x8xf32> to vector<8x1xf32>
    %137 = vector.broadcast %136 : vector<8x1xf32> to vector<8x128xf32>
    %138 = arith.mulf %137, %4 : vector<8x128xf32>
    %139 = arith.addf %138, %7 : vector<8x128xf32>
    %cst_20 = arith.constant dense<0.000000e+00> : vector<8x128xf32>
    %140 = tpu.matmul %135, %1, %cst_20 {dimension_numbers = #tpu.dot_dimension_numbers<[1], [0], [0], [1], [0, 0, 1, 1], [], []>} : vector<8x32xf32>, vector<32x128xf32>, vector<8x128xf32> -> vector<8x128xf32>
    %141 = arith.addf %139, %140 : vector<8x128xf32>
    %142 = arith.negf %141 : vector<8x128xf32>
    %143 = math.exp %142 : vector<8x128xf32>
    %cst_21 = arith.constant 1.000000e+00 : f32
    %144 = vector.broadcast %cst_21 : f32 to vector<8x128xf32>
    %145 = arith.addf %144, %143 : vector<8x128xf32>
    %146 = arith.divf %144, %145 : vector<8x128xf32>
    %147 = math.tanh %141 : vector<8x128xf32>
    %148 = vector.extract_strided_slice %146 {offsets = [0, 0], sizes = [8, 32], strides = [1, 1]} : vector<8x128xf32> to vector<8x32xf32>
    %149 = vector.extract_strided_slice %146 {offsets = [0, 32], sizes = [8, 32], strides = [1, 1]} : vector<8x128xf32> to vector<8x32xf32>
    %150 = vector.extract_strided_slice %147 {offsets = [0, 64], sizes = [8, 32], strides = [1, 1]} : vector<8x128xf32> to vector<8x32xf32>
    %151 = vector.extract_strided_slice %146 {offsets = [0, 96], sizes = [8, 32], strides = [1, 1]} : vector<8x128xf32> to vector<8x32xf32>
    %152 = arith.mulf %149, %133 : vector<8x32xf32>
    %153 = arith.mulf %148, %150 : vector<8x32xf32>
    %154 = arith.addf %152, %153 : vector<8x32xf32>
    %155 = math.tanh %154 : vector<8x32xf32>
    %156 = arith.mulf %151, %155 : vector<8x32xf32>
    %157 = vector.extract_strided_slice %0 {offsets = [0, 7], sizes = [8, 1], strides = [1, 1]} : vector<8x8xf32> to vector<8x1xf32>
    %158 = vector.broadcast %157 : vector<8x1xf32> to vector<8x128xf32>
    %159 = arith.mulf %158, %4 : vector<8x128xf32>
    %160 = arith.addf %159, %7 : vector<8x128xf32>
    %cst_22 = arith.constant dense<0.000000e+00> : vector<8x128xf32>
    %161 = tpu.matmul %156, %1, %cst_22 {dimension_numbers = #tpu.dot_dimension_numbers<[1], [0], [0], [1], [0, 0, 1, 1], [], []>} : vector<8x32xf32>, vector<32x128xf32>, vector<8x128xf32> -> vector<8x128xf32>
    %162 = arith.addf %160, %161 : vector<8x128xf32>
    %163 = arith.negf %162 : vector<8x128xf32>
    %164 = math.exp %163 : vector<8x128xf32>
    %cst_23 = arith.constant 1.000000e+00 : f32
    %165 = vector.broadcast %cst_23 : f32 to vector<8x128xf32>
    %166 = arith.addf %165, %164 : vector<8x128xf32>
    %167 = arith.divf %165, %166 : vector<8x128xf32>
    %168 = math.tanh %162 : vector<8x128xf32>
    %169 = vector.extract_strided_slice %167 {offsets = [0, 0], sizes = [8, 32], strides = [1, 1]} : vector<8x128xf32> to vector<8x32xf32>
    %170 = vector.extract_strided_slice %167 {offsets = [0, 32], sizes = [8, 32], strides = [1, 1]} : vector<8x128xf32> to vector<8x32xf32>
    %171 = vector.extract_strided_slice %168 {offsets = [0, 64], sizes = [8, 32], strides = [1, 1]} : vector<8x128xf32> to vector<8x32xf32>
    %172 = vector.extract_strided_slice %167 {offsets = [0, 96], sizes = [8, 32], strides = [1, 1]} : vector<8x128xf32> to vector<8x32xf32>
    %173 = arith.mulf %170, %154 : vector<8x32xf32>
    %174 = arith.mulf %169, %171 : vector<8x32xf32>
    %175 = arith.addf %173, %174 : vector<8x32xf32>
    %176 = math.tanh %175 : vector<8x32xf32>
    %177 = arith.mulf %172, %176 : vector<8x32xf32>
    %c0_24 = arith.constant 0 : index
    %c0_25 = arith.constant 0 : index
    %178 = vector.load %arg4[%c0_24, %c0_25] : memref<1x32xf32, #tpu.memory_space<vmem>>, vector<1x32xf32>
    %179 = vector.broadcast %178 : vector<1x32xf32> to vector<8x32xf32>
    %180 = arith.mulf %177, %179 : vector<8x32xf32>
    %cst_26 = arith.constant dense<0.000000e+00> : vector<8xf32>
    %181 = vector.multi_reduction <add>, %180, %cst_26 [1] : vector<8x32xf32> to vector<8xf32>
    %182 = vector.shape_cast %181 : vector<8xf32> to vector<8x1xf32>
    %c0_27 = arith.constant 0 : index
    %c0_28 = arith.constant 0 : index
    %183 = vector.load %arg5[%c0_27, %c0_28] : memref<1x1xf32, #tpu.memory_space<vmem>>, vector<1x1xf32>
    %184 = vector.broadcast %183 : vector<1x1xf32> to vector<8x1xf32>
    %185 = arith.addf %182, %184 : vector<8x1xf32>
    %186 = arith.negf %185 : vector<8x1xf32>
    %187 = math.exp %186 : vector<8x1xf32>
    %cst_29 = arith.constant 1.000000e+00 : f32
    %188 = vector.broadcast %cst_29 : f32 to vector<8x1xf32>
    %189 = arith.addf %188, %187 : vector<8x1xf32>
    %190 = arith.divf %188, %189 : vector<8x1xf32>
    %c0_30 = arith.constant 0 : index
    %c0_31 = arith.constant 0 : index
    %191 = vector.load %arg6[%c0_30, %c0_31] : memref<8x1xf32, #tpu.memory_space<vmem>>, vector<8x1xf32>
    tpu.vector_store %arg6[%c0_30, %c0_31], %190 {strides = array<i32>} : memref<8x1xf32, #tpu.memory_space<vmem>>, vector<8x1xf32>,
    return
  }
}

</mosaic_0001>

<bundles_post_ra>
// kernel: tpu_custom_call.1
= control target key start
LH: loop header
LB: loop body
LE: loop exit
PB: predicated region body
PF: predicated region fallthrough
CT: control target
= control target key end

     0   :  { %s972_s0 = inlined_call_operand.hbm [shape: f32[8,8], index: 0, kind: input, shape index: {}]   ;;  %s973_s1 = inlined_call_operand.vmem [shape: f32[1,128], index: 1, kind: input, shape index: {}]   ;;  %s974_s2 = inlined_call_operand.hbm [shape: f32[32,128], index: 2, kind: input, shape index: {}]   ;;  %s975_s3 = inlined_call_operand.vmem [shape: f32[1,128], index: 3, kind: input, shape index: {}]   ;;  %s976_s4 = inlined_call_operand.vmem [shape: f32[1,32], index: 4, kind: input, shape index: {}]   ;;  %s977_s5 = inlined_call_operand.<no memory space> [shape: f32[1,1], index: 5, kind: input, shape index: {}]   ;;  %s978_s6 = inlined_call_operand.vmem [shape: f32[8,1], index: 6, kind: output, shape index: {}]  }
   0x1   :  { %v11_v0 = vstv %s977_s5 }
   0x2   :  { %12 = vst [vmem:[#allocation2] sm:$0x1] %v11_v0 }
   0x3   :  { %13 = vsyncpa [#allocation4], 0  ;;  %s20_s25 = sshll.u32 %s972_s0, 4  ;;  %s21_s25 = int_to_ptr.hbm [resolvable:$true] %s20_s25 }
   0x4   :  { %14 = vsyncpa [#allocation6], 0  ;;  %s830_s26 = smov [#allocation3]   ;;  %s32_s30 = sshll.u32 %s974_s2, 4  ;;  %s33_s30 = int_to_ptr.hbm [resolvable:$true] %s32_s30 }
   0x5   :  { %s22_s27 = sshll.u32 %s830_s26, 4  ;;  %s831_s7 = smov [#allocation5]   ;;  %s23_s27 = int_to_ptr.vmem [resolvable:$true] %s22_s27 }
   0x6   :  { %25 = dma.hbm_to_vmem [thread:$0]  %s21_s25, 128, %s23_s27, [#allocation4]  }
   0x7   :  { %s34_s8 = sshll.u32 %s831_s7, 4  ;;  %s832_s5 = smov 128   ;;  %s35_s8 = int_to_ptr.vmem [resolvable:$true] %s34_s8 }
   0x8   :  { %s833_s9 = smov 8  }
   0x9   :  { %40 = dma.hbm_to_vmem [thread:$0]  %s33_s30, 512, %s35_s8, [#allocation6], %s832_s5, %s832_s5, %s833_s9  }
   0xa   :  { %826 = dma.done.wait [#allocation4], 128  }
   0xb   :  { %827 = vsyncadd [#allocation4], 4294967168 }
   0xc   :  { %828 = dma.done.wait [#allocation6], 512  }
   0xd   :  { %829 = vsyncadd [#allocation6], 4294966784  ;;  %v834_v1 = vmov 0   ;;  %v59_v2 = vld [vmem:[#allocation5 + $0x18] sm:$0xff]  ;;  %v58_v3 = vld [vmem:[#allocation5 + $0x10] sm:$0xff]  ;;  %v835_v7 = vmov 0.0  }
   0xe   :  { %698 = vset.pattern.permute.xlu0 %v834_v1  ;;  %91 = vmatpush.msra.mxu0 %v59_v2  ;;  %v890_v4 = vld [vmem:[#allocation3] sm:$0xff]  ;;  %v57_v5 = vld [vmem:[#allocation5 + $0x8] sm:$0xff]  ;;  %v56_v6 = vld [vmem:[#allocation5] sm:$0xff]  ;;  %s836_s12 = smov 64   ;;  %v838_v37 = vmov 1   ;;  %vm75_vm4 = vcmask 261120  }
   0xf   :  { %160 = vmatpush.msra.mxu1 %v59_v2  ;;  %70 = vperm.xlu0 %698, %v890_v4   ;;  %v896_v8 = vld [vmem:[%s973_s1] ss:$0 sm:$0xff]  ;;  %s837_s1 = smov 32   ;;  %s845_s14 = smov 96  }
  0x10   :  { %229 = vmatpush.msra.mxu2 %v59_v2  ;;  %92 = vmatpush.msra.mxu0 %v58_v3  ;;  %v902_v11 = vld [vmem:[%s975_s3] ss:$0 sm:$0xff] }
  0x11   :  { %161 = vmatpush.msra.mxu1 %v58_v3  ;;  %298 = vmatpush.msra.mxu3 %v59_v2 }
  0x12   :  { %230 = vmatpush.msra.mxu2 %v58_v3  ;;  %93 = vmatpush.msra.mxu0 %v57_v5 }
  0x13   :  { %162 = vmatpush.msra.mxu1 %v57_v5  ;;  %299 = vmatpush.msra.mxu3 %v58_v3 }
  0x14   :  { %231 = vmatpush.msra.mxu2 %v57_v5  ;;  %94 = vmatpush.msra.mxu0 %v56_v6 }
  0x15   :  { %163 = vmatpush.msra.mxu1 %v56_v6  ;;  %95 = vmatmul.f32.vlgmr.msra.gmra.mxu0 %v835_v7 }
  0x16   :  { %232 = vmatpush.msra.mxu2 %v56_v6  ;;  %300 = vmatpush.msra.mxu3 %v57_v5 }
  0x17   :  { %367 = vmatpush.msrb.mxu0 %v59_v2  ;;  %436 = vmatpush.msrb.mxu1 %v59_v2 }
  0x18   :  { %505 = vmatpush.msrb.mxu2 %v59_v2  ;;  %301 = vmatpush.msra.mxu3 %v56_v6 }
  0x19   :  { %368 = vmatpush.msrb.mxu0 %v58_v3  ;;  %437 = vmatpush.msrb.mxu1 %v58_v3 }
  0x1a   :  { %506 = vmatpush.msrb.mxu2 %v58_v3  ;;  %574 = vmatpush.msrb.mxu3 %v59_v2  ;;  %v839_v2 = vmov 2  }
  0x1b   :  { %369 = vmatpush.msrb.mxu0 %v57_v5  ;;  %438 = vmatpush.msrb.mxu1 %v57_v5 }
  0x1c   :  { %507 = vmatpush.msrb.mxu2 %v57_v5  ;;  %575 = vmatpush.msrb.mxu3 %v58_v3 }
  0x1d   :  { %370 = vmatpush.msrb.mxu0 %v56_v6  ;;  %439 = vmatpush.msrb.mxu1 %v56_v6 }
  0x1e   :  { %508 = vmatpush.msrb.mxu2 %v56_v6  ;;  %576 = vmatpush.msrb.mxu3 %v57_v5 }
  0x1f   :  { %699 = vset.pattern.permute.xlu2 %v838_v37  ;;  %700 = vset.pattern.permute.xlu1 %v839_v2 }
  0x20   :  { %577 = vmatpush.msrb.mxu3 %v56_v6 }
  0x81   :  { %v71_v9 = vpop.permute.xlu0 %70 }
  0x82   :  { %v73_v10 = vmul.f32 %v896_v8, %v71_v9 }
  0x84   :  { %v74_v12 = vadd.f32 %v902_v11, %v73_v10 }
  0x92   :  { %v96_v13 = vpop.f32.mrf.mxu0 }
  0x93   :  { %v99_v14 = vadd.f32 %v96_v13, %v74_v12 }
  0x95   :  { %710 = vtanh.f32 %v99_v14  ;;  %v666_v16 = vmul.f32 -1.442695, %v99_v14 }
  0x97   :  { %712 = vpow2.f32 %v666_v16 }
  0x9b   :  { %v711_v15 = vpop.eup %710 }
  0x9c   :  { %122 = vrot.lane.b32.xlu0 %v711_v15, %s836_s12 }
  0x9d   :  { %v713_v17 = vpop.eup %712 }
  0x9e   :  { %v103_v18 = vadd.f32 1.0, %v713_v17 }
  0xa0   :  { %714 = vrcp.f32 %v103_v18  ;;  %v115_v24 = vand.u32 2147483648, %v103_v18  ;;  %vm109_vm1 = vweird.f32 %v103_v18  ;;  %v113_v25 = vand.u32 2147483647, %v103_v18 }
  0xa2   :  { %v116_v27 = vor.u32 1.1754944e-38, %v115_v24  ;;  %vm114_vm3 = vcmp.eq.f32.partialorder %v113_v25, 8.507059e+37 }
  0xa6   :  { %v715_v19 = vpop.eup %714 }
  0xa7   :  { %v105_v20 = vmul.f32 %v715_v19, %v103_v18  ;;  %vm110_vm0 = vweird.f32 %v715_v19 }
  0xa8   :  { %vm111_vm2 = vmor %vm109_vm1, %vm110_vm0 }
  0xa9   :  { %v106_v21 = vsub.f32 1.0, %v105_v20 }
  0xab   :  { %v107_v22 = vmul.f32 %v715_v19, %v106_v21 }
  0xad   :  { %v108_v23 = vadd.f32 %v715_v19, %v107_v22 }
  0xaf   :  { %v112_v26 = vsel %vm111_vm2, %v715_v19, %v108_v23 }
  0xb0   :  { %v117_v29 = vsel %vm114_vm3, %v116_v27, %v112_v26 }
  0xb1   :  { %v120_v31 = vmul.f32 0.0, %v117_v29 }
 0x10e   :  { %v123_v28 = vpop.permute.xlu0 %122 }
 0x10f   :  { %v125_v30 = vmul.f32 %v123_v28, %v117_v29 }
 0x111   :  { %127 = vrot.lane.b32.xlu1 %v125_v30, %s837_s1 }
 0x183   :  { %v128_v32 = vpop.permute.xlu1 %127 }
 0x184   :  { %v130_v33 = vadd.f32 %v128_v32, %v120_v31 }
 0x186   :  { %716 = vtanh.f32 %v130_v33 }
 0x18c   :  { %v717_v34 = vpop.eup %716 }
 0x18d   :  { %133 = vrot.lane.b32.xlu1 %v717_v34, %s836_s12  ;;  %v840_v34 = vmov 3  }
 0x18e   :  { %701 = vset.pattern.permute.xlu0 %v840_v34 }
 0x1ff   :  { %v134_v35 = vpop.permute.xlu1 %133 }
 0x200   :  { %v136_v36 = vmul.f32 %v134_v35, %v117_v29 }
 0x202   :  { %144 = vrot.lane.b32.xlu2 %v136_v36, %s837_s1 }
 0x20a   :  { %138 = vperm.xlu2 %699, %v890_v4  }
 0x25c   :  { %v145_v38 = vpop.permute.xlu2 %144 }
 0x25d   :  { %667 = vmatmul.msk.f32.vlgmr.msra.gmra.mxu1 %vm75_vm4, %v145_v38 }
 0x264   :  { %v139_v39 = vpop.permute.xlu2 %138 }
 0x265   :  { %v141_v40 = vmul.f32 %v896_v8, %v139_v39 }
 0x267   :  { %v142_v41 = vadd.f32 %v902_v11, %v141_v40 }
 0x2da   :  { %v165_v42 = vpop.f32.mrf.mxu1 }
 0x2db   :  { %v168_v43 = vadd.f32 %v165_v42, %v142_v41 }
 0x2dd   :  { %718 = vtanh.f32 %v168_v43  ;;  %v668_v45 = vmul.f32 -1.442695, %v168_v43 }
 0x2df   :  { %720 = vpow2.f32 %v668_v45 }
 0x2e3   :  { %v719_v44 = vpop.eup %718 }
 0x2e4   :  { %191 = vrot.lane.b32.xlu0 %v719_v44, %s836_s12 }
 0x2e5   :  { %v721_v46 = vpop.eup %720 }
 0x2e6   :  { %v172_v47 = vadd.f32 1.0, %v721_v46 }
 0x2e8   :  { %722 = vrcp.f32 %v172_v47  ;;  %v184_v53 = vand.u32 2147483648, %v172_v47  ;;  %vm178_vm6 = vweird.f32 %v172_v47  ;;  %v182_v54 = vand.u32 2147483647, %v172_v47 }
 0x2ea   :  { %v185_v56 = vor.u32 1.1754944e-38, %v184_v53  ;;  %vm183_vm8 = vcmp.eq.f32.partialorder %v182_v54, 8.507059e+37 }
 0x2ee   :  { %v723_v48 = vpop.eup %722 }
 0x2ef   :  { %v174_v49 = vmul.f32 %v723_v48, %v172_v47  ;;  %vm179_vm5 = vweird.f32 %v723_v48 }
 0x2f0   :  { %vm180_vm7 = vmor %vm178_vm6, %vm179_vm5 }
 0x2f1   :  { %v175_v50 = vsub.f32 1.0, %v174_v49 }
 0x2f3   :  { %v176_v51 = vmul.f32 %v723_v48, %v175_v50 }
 0x2f5   :  { %v177_v52 = vadd.f32 %v723_v48, %v176_v51 }
 0x2f7   :  { %v181_v55 = vsel %vm180_vm7, %v723_v48, %v177_v52 }
 0x2f8   :  { %v186_v58 = vsel %vm183_vm8, %v185_v56, %v181_v55 }
 0x2f9   :  { %v189_v60 = vmul.f32 %v186_v58, %v130_v33 }
 0x356   :  { %v192_v57 = vpop.permute.xlu0 %191 }
 0x357   :  { %v194_v59 = vmul.f32 %v192_v57, %v186_v58 }
 0x359   :  { %196 = vrot.lane.b32.xlu1 %v194_v59, %s837_s1 }
 0x361   :  { %207 = vperm.xlu1 %700, %v890_v4  }
 0x3cb   :  { %v197_v61 = vpop.permute.xlu1 %196 }
 0x3cc   :  { %v199_v62 = vadd.f32 %v197_v61, %v189_v60 }
 0x3ce   :  { %724 = vtanh.f32 %v199_v62 }
 0x3d3   :  { %v208_v5 = vpop.permute.xlu1 %207 }
 0x3d4   :  { %v725_v63 = vpop.eup %724  ;;  %v210_v6 = vmul.f32 %v896_v8, %v208_v5 }
 0x3d5   :  { %202 = vrot.lane.b32.xlu2 %v725_v63, %s836_s12  ;;  %v841_v63 = vmov 4  }
 0x3d6   :  { %v211_v7 = vadd.f32 %v902_v11, %v210_v6 }
 0x42f   :  { %v203_v0 = vpop.permute.xlu2 %202 }
 0x430   :  { %v205_v1 = vmul.f32 %v203_v0, %v186_v58 }
 0x432   :  { %213 = vrot.lane.b32.xlu0 %v205_v1, %s837_s1 }
 0x4a4   :  { %v214_v3 = vpop.permute.xlu0 %213 }
 0x4a5   :  { %669 = vmatmul.msk.f32.vlgmr.msra.gmra.mxu2 %vm75_vm4, %v214_v3 }
 0x528   :  { %v234_v9 = vpop.f32.mrf.mxu2 }
 0x529   :  { %v237_v10 = vadd.f32 %v234_v9, %v211_v7 }
 0x52b   :  { %726 = vtanh.f32 %v237_v10  ;;  %v670_v13 = vmul.f32 -1.442695, %v237_v10 }
 0x52d   :  { %728 = vpow2.f32 %v670_v13 }
 0x531   :  { %v727_v12 = vpop.eup %726 }
 0x532   :  { %260 = vrot.lane.b32.xlu2 %v727_v12, %s836_s12 }
 0x533   :  { %v729_v14 = vpop.eup %728 }
 0x534   :  { %v241_v15 = vadd.f32 1.0, %v729_v14 }
 0x536   :  { %730 = vrcp.f32 %v241_v15  ;;  %v253_v21 = vand.u32 2147483648, %v241_v15  ;;  %vm247_vm10 = vweird.f32 %v241_v15  ;;  %v251_v22 = vand.u32 2147483647, %v241_v15 }
 0x538   :  { %v254_v24 = vor.u32 1.1754944e-38, %v253_v21  ;;  %vm252_vm12 = vcmp.eq.f32.partialorder %v251_v22, 8.507059e+37 }
 0x53c   :  { %v731_v16 = vpop.eup %730 }
 0x53d   :  { %v243_v17 = vmul.f32 %v731_v16, %v241_v15  ;;  %vm248_vm9 = vweird.f32 %v731_v16 }
 0x53e   :  { %vm249_vm11 = vmor %vm247_vm10, %vm248_vm9 }
 0x53f   :  { %v244_v18 = vsub.f32 1.0, %v243_v17 }
 0x541   :  { %v245_v19 = vmul.f32 %v731_v16, %v244_v18 }
 0x543   :  { %v246_v20 = vadd.f32 %v731_v16, %v245_v19 }
 0x545   :  { %v250_v23 = vsel %vm249_vm11, %v731_v16, %v246_v20 }
 0x546   :  { %v255_v26 = vsel %vm252_vm12, %v254_v24, %v250_v23 }
 0x547   :  { %v258_v28 = vmul.f32 %v255_v26, %v199_v62 }
 0x58c   :  { %v261_v25 = vpop.permute.xlu2 %260 }
 0x58d   :  { %v263_v27 = vmul.f32 %v261_v25, %v255_v26 }
 0x58f   :  { %265 = vrot.lane.b32.xlu0 %v263_v27, %s837_s1 }
 0x597   :  { %276 = vperm.xlu0 %701, %v890_v4  }
 0x59f   :  { %702 = vset.pattern.permute.xlu0 %v841_v63 }
 0x5a0   :  { %345 = vperm.xlu0 %702, %v890_v4  }
 0x601   :  { %v266_v29 = vpop.permute.xlu0 %265 }
 0x602   :  { %v268_v30 = vadd.f32 %v266_v29, %v258_v28 }
 0x604   :  { %732 = vtanh.f32 %v268_v30 }
 0x609   :  { %v277_v36 = vpop.permute.xlu0 %276 }
 0x60a   :  { %v733_v31 = vpop.eup %732  ;;  %v279_v37 = vmul.f32 %v896_v8, %v277_v36 }
 0x60b   :  { %271 = vrot.lane.b32.xlu1 %v733_v31, %s836_s12  ;;  %v842_v31 = vmov 5  }
 0x60c   :  { %v280_v38 = vadd.f32 %v902_v11, %v279_v37  ;;  %703 = vset.pattern.permute.xlu0 %v842_v31 }
 0x60d   :  { %414 = vperm.xlu0 %703, %v890_v4  }
 0x612   :  { %v346_v1 = vpop.permute.xlu0 %345 }
 0x613   :  { %v348_v2 = vmul.f32 %v896_v8, %v346_v1 }
 0x615   :  { %v349_v3 = vadd.f32 %v902_v11, %v348_v2 }
 0x67d   :  { %v272_v32 = vpop.permute.xlu1 %271 }
 0x67e   :  { %v274_v33 = vmul.f32 %v272_v32, %v255_v26 }
 0x680   :  { %282 = vrot.lane.b32.xlu2 %v274_v33, %s837_s1  ;;  %v415_v33 = vpop.permute.xlu0 %414 }
 0x681   :  { %v417_v34 = vmul.f32 %v896_v8, %v415_v33 }
 0x6da   :  { %v283_v35 = vpop.permute.xlu2 %282 }
 0x6db   :  { %671 = vmatmul.msk.f32.vlgmr.msra.gmra.mxu3 %vm75_vm4, %v283_v35  ;;  %v418_v35 = vadd.f32 %v902_v11, %v417_v34 }
 0x75e   :  { %v303_v39 = vpop.f32.mrf.mxu3 }
 0x75f   :  { %v306_v40 = vadd.f32 %v303_v39, %v280_v38 }
 0x761   :  { %734 = vtanh.f32 %v306_v40  ;;  %v672_v42 = vmul.f32 -1.442695, %v306_v40 }
 0x763   :  { %736 = vpow2.f32 %v672_v42 }
 0x767   :  { %v735_v41 = vpop.eup %734 }
 0x768   :  { %329 = vrot.lane.b32.xlu1 %v735_v41, %s836_s12 }
 0x769   :  { %v737_v43 = vpop.eup %736 }
 0x76a   :  { %v310_v44 = vadd.f32 1.0, %v737_v43 }
 0x76c   :  { %738 = vrcp.f32 %v310_v44  ;;  %v322_v50 = vand.u32 2147483648, %v310_v44  ;;  %vm316_vm14 = vweird.f32 %v310_v44  ;;  %v320_v51 = vand.u32 2147483647, %v310_v44 }
 0x76e   :  { %v323_v53 = vor.u32 1.1754944e-38, %v322_v50  ;;  %vm321_vm0 = vcmp.eq.f32.partialorder %v320_v51, 8.507059e+37 }
 0x772   :  { %v739_v45 = vpop.eup %738 }
 0x773   :  { %v312_v46 = vmul.f32 %v739_v45, %v310_v44  ;;  %vm317_vm13 = vweird.f32 %v739_v45 }
 0x774   :  { %vm318_vm15 = vmor %vm316_vm14, %vm317_vm13 }
 0x775   :  { %v313_v47 = vsub.f32 1.0, %v312_v46 }
 0x777   :  { %v314_v48 = vmul.f32 %v739_v45, %v313_v47 }
 0x779   :  { %v315_v49 = vadd.f32 %v739_v45, %v314_v48 }
 0x77b   :  { %v319_v52 = vsel %vm318_vm15, %v739_v45, %v315_v49 }
 0x77c   :  { %v324_v55 = vsel %vm321_vm0, %v323_v53, %v319_v52 }
 0x77d   :  { %v327_v57 = vmul.f32 %v324_v55, %v268_v30 }
 0x7da   :  { %v330_v54 = vpop.permute.xlu1 %329 }
 0x7db   :  { %v332_v56 = vmul.f32 %v330_v54, %v324_v55 }
 0x7dd   :  { %334 = vrot.lane.b32.xlu2 %v332_v56, %s837_s1 }
 0x837   :  { %v335_v58 = vpop.permute.xlu2 %334 }
 0x838   :  { %v337_v59 = vadd.f32 %v335_v58, %v327_v57 }
 0x83a   :  { %740 = vtanh.f32 %v337_v59 }
 0x840   :  { %v741_v60 = vpop.eup %740 }
 0x841   :  { %340 = vrot.lane.b32.xlu1 %v741_v60, %s836_s12  ;;  %v843_v60 = vmov 6  }
 0x842   :  { %704 = vset.pattern.permute.xlu0 %v843_v60 }
 0x843   :  { %483 = vperm.xlu0 %704, %v890_v4  }
 0x8b3   :  { %v341_v61 = vpop.permute.xlu1 %340 }
 0x8b4   :  { %v343_v62 = vmul.f32 %v341_v61, %v324_v55 }
 0x8b6   :  { %351 = vrot.lane.b32.xlu2 %v343_v62, %s837_s1  ;;  %v484_v62 = vpop.permute.xlu0 %483 }
 0x8b7   :  { %v486_v63 = vmul.f32 %v896_v8, %v484_v62 }
 0x910   :  { %v352_v0 = vpop.permute.xlu2 %351 }
 0x911   :  { %673 = vmatmul.msk.f32.vlgmr.msrb.gmra.mxu0 %vm75_vm4, %v352_v0  ;;  %v487_v0 = vadd.f32 %v902_v11, %v486_v63 }
 0x98e   :  { %v372_v5 = vpop.f32.mrf.mxu0 }
 0x98f   :  { %v375_v6 = vadd.f32 %v372_v5, %v349_v3 }
 0x991   :  { %742 = vtanh.f32 %v375_v6  ;;  %v674_v9 = vmul.f32 -1.442695, %v375_v6 }
 0x993   :  { %744 = vpow2.f32 %v674_v9 }
 0x997   :  { %v743_v7 = vpop.eup %742 }
 0x998   :  { %398 = vrot.lane.b32.xlu1 %v743_v7, %s836_s12 }
 0x999   :  { %v745_v10 = vpop.eup %744 }
 0x99a   :  { %v379_v12 = vadd.f32 1.0, %v745_v10 }
 0x99c   :  { %746 = vrcp.f32 %v379_v12  ;;  %v391_v18 = vand.u32 2147483648, %v379_v12  ;;  %vm385_vm2 = vweird.f32 %v379_v12  ;;  %v389_v19 = vand.u32 2147483647, %v379_v12 }
 0x99e   :  { %v392_v21 = vor.u32 1.1754944e-38, %v391_v18  ;;  %vm390_vm5 = vcmp.eq.f32.partialorder %v389_v19, 8.507059e+37 }
 0x9a2   :  { %v747_v13 = vpop.eup %746 }
 0x9a3   :  { %v381_v14 = vmul.f32 %v747_v13, %v379_v12  ;;  %vm386_vm1 = vweird.f32 %v747_v13 }
 0x9a4   :  { %vm387_vm3 = vmor %vm385_vm2, %vm386_vm1 }
 0x9a5   :  { %v382_v15 = vsub.f32 1.0, %v381_v14 }
 0x9a7   :  { %v383_v16 = vmul.f32 %v747_v13, %v382_v15 }
 0x9a9   :  { %v384_v17 = vadd.f32 %v747_v13, %v383_v16 }
 0x9ab   :  { %v388_v20 = vsel %vm387_vm3, %v747_v13, %v384_v17 }
 0x9ac   :  { %v393_v23 = vsel %vm390_vm5, %v392_v21, %v388_v20  ;;  %vm658_vm5 = vcmask 7168  }
 0x9ad   :  { %v396_v25 = vmul.f32 %v393_v23, %v337_v59 }
 0xa0a   :  { %v399_v22 = vpop.permute.xlu1 %398 }
 0xa0b   :  { %v401_v24 = vmul.f32 %v399_v22, %v393_v23 }
 0xa0d   :  { %403 = vrot.lane.b32.xlu2 %v401_v24, %s837_s1 }
 0xa67   :  { %v404_v26 = vpop.permute.xlu2 %403 }
 0xa68   :  { %v406_v27 = vadd.f32 %v404_v26, %v396_v25 }
 0xa6a   :  { %748 = vtanh.f32 %v406_v27 }
 0xa70   :  { %v749_v28 = vpop.eup %748 }
 0xa71   :  { %409 = vrot.lane.b32.xlu1 %v749_v28, %s836_s12  ;;  %v844_v28 = vmov 7  }
 0xa72   :  { %705 = vset.pattern.permute.xlu0 %v844_v28 }
 0xa73   :  { %552 = vperm.xlu0 %705, %v890_v4  }
 0xae3   :  { %v410_v29 = vpop.permute.xlu1 %409 }
 0xae4   :  { %v412_v30 = vmul.f32 %v410_v29, %v393_v23 }
 0xae6   :  { %420 = vrot.lane.b32.xlu2 %v412_v30, %s837_s1  ;;  %v553_v30 = vpop.permute.xlu0 %552 }
 0xae7   :  { %v555_v31 = vmul.f32 %v896_v8, %v553_v30 }
 0xb40   :  { %v421_v32 = vpop.permute.xlu2 %420 }
 0xb41   :  { %675 = vmatmul.msk.f32.vlgmr.msrb.gmra.mxu1 %vm75_vm4, %v421_v32  ;;  %v556_v32 = vadd.f32 %v902_v11, %v555_v31 }
 0xbbe   :  { %v441_v36 = vpop.f32.mrf.mxu1 }
 0xbbf   :  { %v444_v37 = vadd.f32 %v441_v36, %v418_v35 }
 0xbc1   :  { %750 = vtanh.f32 %v444_v37  ;;  %v676_v39 = vmul.f32 -1.442695, %v444_v37 }
 0xbc3   :  { %752 = vpow2.f32 %v676_v39 }
 0xbc7   :  { %v751_v38 = vpop.eup %750 }
 0xbc8   :  { %467 = vrot.lane.b32.xlu1 %v751_v38, %s836_s12 }
 0xbc9   :  { %v753_v40 = vpop.eup %752 }
 0xbca   :  { %v448_v41 = vadd.f32 1.0, %v753_v40 }
 0xbcc   :  { %754 = vrcp.f32 %v448_v41  ;;  %v460_v47 = vand.u32 2147483648, %v448_v41  ;;  %vm454_vm7 = vweird.f32 %v448_v41  ;;  %v458_v48 = vand.u32 2147483647, %v448_v41 }
 0xbce   :  { %v461_v50 = vor.u32 1.1754944e-38, %v460_v47  ;;  %vm459_vm9 = vcmp.eq.f32.partialorder %v458_v48, 8.507059e+37  ;;  %v708_v48 = vld [vmem:[%s976_s4] ss:$0 sm:$0xff] }
 0xbd2   :  { %v755_v42 = vpop.eup %754 }
 0xbd3   :  { %v450_v43 = vmul.f32 %v755_v42, %v448_v41  ;;  %vm455_vm6 = vweird.f32 %v755_v42 }
 0xbd4   :  { %vm456_vm8 = vmor %vm454_vm7, %vm455_vm6 }
 0xbd5   :  { %v451_v44 = vsub.f32 1.0, %v450_v43 }
 0xbd7   :  { %v452_v45 = vmul.f32 %v755_v42, %v451_v44 }
 0xbd9   :  { %v453_v46 = vadd.f32 %v755_v42, %v452_v45 }
 0xbdb   :  { %v457_v49 = vsel %vm456_vm8, %v755_v42, %v453_v46 }
 0xbdc   :  { %v462_v52 = vsel %vm459_vm9, %v461_v50, %v457_v49 }
 0xbdd   :  { %v465_v54 = vmul.f32 %v462_v52, %v406_v27 }
 0xc3a   :  { %v468_v51 = vpop.permute.xlu1 %467 }
 0xc3b   :  { %v470_v53 = vmul.f32 %v468_v51, %v462_v52 }
 0xc3d   :  { %472 = vrot.lane.b32.xlu2 %v470_v53, %s837_s1 }
 0xc97   :  { %v473_v55 = vpop.permute.xlu2 %472 }
 0xc98   :  { %v475_v56 = vadd.f32 %v473_v55, %v465_v54 }
 0xc9a   :  { %756 = vtanh.f32 %v475_v56 }
 0xca0   :  { %v757_v57 = vpop.eup %756 }
 0xca1   :  { %478 = vrot.lane.b32.xlu1 %v757_v57, %s836_s12 }
 0xd13   :  { %v479_v58 = vpop.permute.xlu1 %478 }
 0xd14   :  { %v481_v59 = vmul.f32 %v479_v58, %v462_v52 }
 0xd16   :  { %489 = vrot.lane.b32.xlu2 %v481_v59, %s837_s1  ;;  %v709_v59 = vld [vmem:[#allocation2] ss:$0 sm:$0xff] }
 0xd70   :  { %v490_v61 = vpop.permute.xlu2 %489 }
 0xd71   :  { %677 = vmatmul.msk.f32.vlgmr.msrb.gmra.mxu2 %vm75_vm4, %v490_v61 }
 0xdf4   :  { %v510_v1 = vpop.f32.mrf.mxu2 }
 0xdf5   :  { %v513_v2 = vadd.f32 %v510_v1, %v487_v0 }
 0xdf7   :  { %758 = vtanh.f32 %v513_v2  ;;  %v678_v5 = vmul.f32 -1.442695, %v513_v2 }
 0xdf9   :  { %760 = vpow2.f32 %v678_v5 }
 0xdfd   :  { %v759_v3 = vpop.eup %758 }
 0xdfe   :  { %536 = vrot.lane.b32.xlu1 %v759_v3, %s836_s12 }
 0xdff   :  { %v761_v6 = vpop.eup %760 }
 0xe00   :  { %v517_v7 = vadd.f32 1.0, %v761_v6 }
 0xe02   :  { %762 = vrcp.f32 %v517_v7  ;;  %v529_v15 = vand.u32 2147483648, %v517_v7  ;;  %vm523_vm11 = vweird.f32 %v517_v7  ;;  %v527_v16 = vand.u32 2147483647, %v517_v7 }
 0xe04   :  { %v530_v18 = vor.u32 1.1754944e-38, %v529_v15  ;;  %vm528_vm13 = vcmp.eq.f32.partialorder %v527_v16, 8.507059e+37 }
 0xe08   :  { %v763_v9 = vpop.eup %762 }
 0xe09   :  { %v519_v10 = vmul.f32 %v763_v9, %v517_v7  ;;  %vm524_vm10 = vweird.f32 %v763_v9 }
 0xe0a   :  { %vm525_vm12 = vmor %vm523_vm11, %vm524_vm10 }
 0xe0b   :  { %v520_v12 = vsub.f32 1.0, %v519_v10 }
 0xe0d   :  { %v521_v13 = vmul.f32 %v763_v9, %v520_v12 }
 0xe0f   :  { %v522_v14 = vadd.f32 %v763_v9, %v521_v13 }
 0xe11   :  { %v526_v17 = vsel %vm525_vm12, %v763_v9, %v522_v14 }
 0xe12   :  { %v531_v20 = vsel %vm528_vm13, %v530_v18, %v526_v17 }
 0xe13   :  { %v534_v22 = vmul.f32 %v531_v20, %v475_v56 }
 0xe70   :  { %v537_v19 = vpop.permute.xlu1 %536 }
 0xe71   :  { %v539_v21 = vmul.f32 %v537_v19, %v531_v20 }
 0xe73   :  { %541 = vrot.lane.b32.xlu2 %v539_v21, %s837_s1 }
 0xecd   :  { %v542_v23 = vpop.permute.xlu2 %541 }
 0xece   :  { %v544_v24 = vadd.f32 %v542_v23, %v534_v22 }
 0xed0   :  { %764 = vtanh.f32 %v544_v24 }
 0xed6   :  { %v765_v25 = vpop.eup %764 }
 0xed7   :  { %547 = vrot.lane.b32.xlu1 %v765_v25, %s836_s12 }
 0xf49   :  { %v548_v26 = vpop.permute.xlu1 %547 }
 0xf4a   :  { %v550_v27 = vmul.f32 %v548_v26, %v531_v20 }
 0xf4c   :  { %558 = vrot.lane.b32.xlu2 %v550_v27, %s837_s1 }
 0xfa6   :  { %v559_v29 = vpop.permute.xlu2 %558 }
 0xfa7   :  { %679 = vmatmul.msk.f32.vlgmr.msrb.gmra.mxu3 %vm75_vm4, %v559_v29 }
0x102a   :  { %v579_v33 = vpop.f32.mrf.mxu3 }
0x102b   :  { %v582_v34 = vadd.f32 %v579_v33, %v556_v32 }
0x102d   :  { %766 = vtanh.f32 %v582_v34  ;;  %v680_v36 = vmul.f32 -1.442695, %v582_v34 }
0x102f   :  { %768 = vpow2.f32 %v680_v36 }
0x1033   :  { %v767_v35 = vpop.eup %766 }
0x1034   :  { %605 = vrot.lane.b32.xlu1 %v767_v35, %s836_s12 }
0x1035   :  { %v769_v37 = vpop.eup %768 }
0x1036   :  { %v586_v38 = vadd.f32 1.0, %v769_v37 }
0x1038   :  { %770 = vrcp.f32 %v586_v38  ;;  %v598_v8 = vand.u32 2147483648, %v586_v38  ;;  %vm592_vm15 = vweird.f32 %v586_v38  ;;  %v596_v11 = vand.u32 2147483647, %v586_v38 }
0x103a   :  { %v599_v44 = vor.u32 1.1754944e-38, %v598_v8  ;;  %vm597_vm1 = vcmp.eq.f32.partialorder %v596_v11, 8.507059e+37 }
0x103e   :  { %v771_v4 = vpop.eup %770 }
0x103f   :  { %v588_v39 = vmul.f32 %v771_v4, %v586_v38  ;;  %vm593_vm14 = vweird.f32 %v771_v4 }
0x1040   :  { %vm594_vm0 = vmor %vm592_vm15, %vm593_vm14 }
0x1041   :  { %v589_v40 = vsub.f32 1.0, %v588_v39 }
0x1043   :  { %v590_v41 = vmul.f32 %v771_v4, %v589_v40 }
0x1045   :  { %v591_v42 = vadd.f32 %v771_v4, %v590_v41 }
0x1047   :  { %v595_v43 = vsel %vm594_vm0, %v771_v4, %v591_v42 }
0x1048   :  { %v600_v46 = vsel %vm597_vm1, %v599_v44, %v595_v43 }
0x1049   :  { %v603_v49 = vmul.f32 %v600_v46, %v544_v24 }
0x10a6   :  { %v606_v45 = vpop.permute.xlu1 %605 }
0x10a7   :  { %v608_v47 = vmul.f32 %v606_v45, %v600_v46 }
0x10a9   :  { %610 = vrot.lane.b32.xlu2 %v608_v47, %s837_s1 }
0x10b1   :  { %623 = vrot.lane.b32.xlu2 %v708_v48, %s845_s14 }
0x1103   :  { %v611_v50 = vpop.permute.xlu2 %610 }
0x1104   :  { %v613_v51 = vadd.f32 %v611_v50, %v603_v49 }
0x1106   :  { %772 = vtanh.f32 %v613_v51 }
0x110b   :  { %v624_v54 = vpop.permute.xlu2 %623 }
0x110c   :  { %v773_v52 = vpop.eup %772 }
0x110d   :  { %616 = vrot.lane.b32.xlu1 %v773_v52, %s836_s12 }
0x117f   :  { %v617_v53 = vpop.permute.xlu1 %616 }
0x1180   :  { %v619_v55 = vmul.f32 %v617_v53, %v600_v46 }
0x1182   :  { %v626_v56 = vmul.f32 %v624_v54, %v619_v55 }
0x1184   :  { %628 = vrot.lane.b32.xlu0 %v626_v56, %s837_s1 }
0x11f6   :  { %v629_v57 = vpop.permute.xlu0 %628 }
0x11f7   :  { %v631_v58 = vsel %vm75_vm4, %v629_v57, 0.0 }
0x11f8   :  { %632 = vadd.xlane.f32.xlu1 %v631_v58 }
0x126b   :  { %v633_v60 = vpop.xlane.xlu1 %632 }
0x126c   :  { %v638_v61 = vadd.f32 %v709_v59, %v633_v60 }
0x126e   :  { %v681_v62 = vmul.f32 -1.442695, %v638_v61 }
0x1270   :  { %774 = vpow2.f32 %v681_v62 }
0x1276   :  { %v775_v63 = vpop.eup %774 }
0x1277   :  { %v642_v0 = vadd.f32 1.0, %v775_v63 }
0x1279   :  { %776 = vrcp.f32 %v642_v0  ;;  %v654_v5 = vand.u32 2147483648, %v642_v0  ;;  %v652_v7 = vand.u32 2147483647, %v642_v0  ;;  %vm648_vm3 = vweird.f32 %v642_v0 }
0x127b   :  { %v655_v10 = vor.u32 1.1754944e-38, %v654_v5  ;;  %vm653_vm6 = vcmp.eq.f32.partialorder %v652_v7, 8.507059e+37 }
0x127f   :  { %v777_v1 = vpop.eup %776 }
0x1280   :  { %v644_v2 = vmul.f32 %v777_v1, %v642_v0  ;;  %vm649_vm2 = vweird.f32 %v777_v1 }
0x1281   :  { %vm650_vm4 = vmor %vm648_vm3, %vm649_vm2 }
0x1282   :  { %v645_v3 = vsub.f32 1.0, %v644_v2 }
0x1284   :  { %v646_v6 = vmul.f32 %v777_v1, %v645_v3 }
0x1286   :  { %v647_v9 = vadd.f32 %v777_v1, %v646_v6 }
0x1288   :  { %v651_v12 = vsel %vm650_vm4, %v777_v1, %v647_v9 }
0x1289   :  { %v656_v13 = vsel %vm653_vm6, %v655_v10, %v651_v12 }
0x128a   :  { %659 = vst.msk [vmem:[%s978_s6] sm:$0xff] %vm658_vm5, %v656_v13 }
0x128b   :  { %664 = vsyncpa [#allocation4], 1 }
0x128c   :  { %665 = vsyncpa [#allocation6], 1 }

</bundles_post_ra>
